<compile_context>
chip_gen: v5e
topology: v5e:2x2
jax: 0.10.0
libtpu: 0.0.40
codegen_flags: <defaults>
</compile_context>

<pallas_src>
import jax
import jax.numpy as jnp
from jax.experimental import pallas as pl
from jax.experimental.pallas import tpu as pltpu


_SUBLANE = 8           # f32 sublane granularity
_MIN_SPLIT_BATCH = 256  # below this, one grid step (per-step overhead dominates)


def _round_up(x, m):
    return ((x + m - 1) // m) * m


def _cdiv(a, b):
    return (a + b - 1) // b


def _batch_tiling(batch, block_b):
    """Pick (tile_rows, padded_batch).

    Small batches run as a single full-array block (block dims == array dims,
    so no padding and no post-slice).  Larger batches are split into >= 2
    sublane-aligned tiles so the 'parallel' batch axis can shard across v7x's
    two TensorCores and stream through double-buffered VMEM.
    """
    if batch < _MIN_SPLIT_BATCH:
        return batch, batch
    steps = max(2, _cdiv(batch, block_b))
    tb = _round_up(_cdiv(batch, steps), _SUBLANE)
    return tb, _round_up(batch, tb)


def _simdqn_kernel(x_ref, w1_ref, b1_ref, w2_ref, b2_ref, w3_ref, b3_ref, out_ref):
    # x_ref: (TB, in_dim) f32; wN_ref: (in, out) f32; bN_ref: (1, out) f32.
    # Three MXU matmuls with explicit f32 accumulation; bias + ReLU epilogue
    # on the VPU.  Everything stays f32 (this kernel is DMA/overhead-bound,
    # not MXU-bound, so bf16 buys nothing and costs accuracy).
    x = x_ref[...]
    h1 = jnp.maximum(
        jnp.dot(x, w1_ref[...], preferred_element_type=jnp.float32) + b1_ref[...], 0.0)
    h2 = jnp.maximum(
        jnp.dot(h1, w2_ref[...], preferred_element_type=jnp.float32) + b2_ref[...], 0.0)
    out = jnp.dot(h2, w3_ref[...], preferred_element_type=jnp.float32) + b3_ref[...]
    out_ref[...] = out.astype(out_ref.dtype)


def simdqn_forward(state, w1, b1, w2, b2, w3, b3, *, block_b=1024):
    """SimDQN forward.

    state: (B, in_dim) f32; wN: (in, out) f32; bN: (1, out) f32.
    Returns (B, n_actions) f32 Q-values.  Params need no per-call prep
    (no padding, no casting) -- pass them exactly as produced by init_params.
    """
    B, in_dim = state.shape
    fc1 = w1.shape[1]
    fc2 = w2.shape[1]
    n_actions = w3.shape[1]

    tb, b_pad = _batch_tiling(B, block_b)
    x = state if b_pad == B else jnp.pad(state, ((0, b_pad - B), (0, 0)))
    grid = (b_pad // tb,)

    def resident(arr):
        # Same block every grid step -> stays VMEM-resident (no re-DMA).
        return pl.BlockSpec(arr.shape, lambda i: (0, 0))

    flops = 2 * b_pad * (in_dim * fc1 + fc1 * fc2 + fc2 * n_actions)
    bytes_accessed = 4 * (
        b_pad * in_dim                                    # activations in (f32)
        + in_dim * fc1 + fc1 * fc2 + fc2 * n_actions      # weights (f32)
        + fc1 + fc2 + n_actions                           # biases (f32)
        + b_pad * n_actions                               # Q-values out (f32)
    )

    out = pl.pallas_call(
        _simdqn_kernel,
        out_shape=jax.ShapeDtypeStruct((b_pad, n_actions), jnp.float32),
        grid=grid,
        in_specs=[
            pl.BlockSpec((tb, in_dim), lambda i: (i, 0)),   # activations stream
            resident(w1), resident(b1),
            resident(w2), resident(b2),
            resident(w3), resident(b3),
        ],
        out_specs=pl.BlockSpec((tb, n_actions), lambda i: (i, 0)),
        compiler_params=pltpu.CompilerParams(
            dimension_semantics=("parallel",)),
        cost_estimate=pl.CostEstimate(
            flops=flops, transcendentals=0, bytes_accessed=bytes_accessed),
    )(x, w1, b1, w2, b2, w3, b3)

    return out if b_pad == B else out[:B]


def init_params(key, input_dim, fc1_dims, fc2_dims, n_actions):
    """Deterministic init mirroring nn.Linear's uniform(-1/sqrt(fan_in), +1/sqrt(fan_in)).
    Weights stored as (in, out), i.e. W.T relative to torch's (out, in).
    Everything is f32 -- no further per-call preparation is required."""
    keys = jax.random.split(key, 6)

    def lin(kw, kb, fan_in, fan_out):
        bound = 1.0 / jnp.sqrt(float(fan_in))
        w = jax.random.uniform(kw, (fan_in, fan_out), jnp.float32, -bound, bound)
        b = jax.random.uniform(kb, (1, fan_out), jnp.float32, -bound, bound)
        return w, b

    w1, b1 = lin(keys[0], keys[1], input_dim, fc1_dims)
    w2, b2 = lin(keys[2], keys[3], fc1_dims, fc2_dims)
    w3, b3 = lin(keys[4], keys[5], fc2_dims, n_actions)
    return w1, b1, w2, b2, w3, b3


# TODO(synk): Adam optimizer / MSELoss / device placement from the torch module are
# training plumbing with no kernel equivalent; only the forward pass is implemented.


if __name__ == "__main__":
    # Shapes consistent with the module: input_dims=(8,), fc1=32, fc2=32, n_actions=4.
    batch, input_dim, fc1_dims, fc2_dims, n_actions = 2, 8, 32, 32, 4

    key = jax.random.PRNGKey(0)
    k_state, k_params, k_big = jax.random.split(key, 3)
    state = jax.random.normal(k_state, (batch, input_dim), dtype=jnp.float32)
    params = init_params(k_params, input_dim, fc1_dims, fc2_dims, n_actions)

    actions = jax.block_until_ready(simdqn_forward(state, *params))
    assert actions.shape == (batch, n_actions)

    # Full-f32 reference (original torch semantics).  HIGHEST precision so the
    # XLA reference matmuls are true f32; modest tolerance covers any residual
    # MXU pass-decomposition differences.
    def ref_forward(x, w1, b1, w2, b2, w3, b3):
        p = jax.lax.Precision.HIGHEST
        h1 = jnp.maximum(jnp.dot(x, w1, precision=p) + b1, 0.0)
        h2 = jnp.maximum(jnp.dot(h1, w2, precision=p) + b2, 0.0)
        return jnp.dot(h2, w3, precision=p) + b3

    ref = ref_forward(state, *params)
    assert jnp.allclose(actions, ref, atol=1e-2, rtol=1e-2)

    # Larger batch exercises row padding and the >=2-step (megacore-splittable)
    # batch grid: B=1000 -> tb=504, grid=(2,).
    big_state = jax.random.normal(k_big, (1000, input_dim), dtype=jnp.float32)
    big = jax.block_until_ready(simdqn_forward(big_state, *params))
    assert big.shape == (1000, n_actions)
    assert jnp.allclose(big, ref_forward(big_state, *params), atol=1e-2, rtol=1e-2)

    print("KERNEL_OK")
</pallas_src>

<mosaic_0001>
module attributes {stable_mosaic.version = 11 : i64} {
  func.func @_simdqn_kernel(%arg0: i32, %arg1: memref<2x8xf32, #tpu.memory_space<vmem>>, %arg2: memref<8x32xf32, #tpu.memory_space<vmem>>, %arg3: memref<1x32xf32, #tpu.memory_space<vmem>>, %arg4: memref<32x32xf32, #tpu.memory_space<vmem>>, %arg5: memref<1x32xf32, #tpu.memory_space<vmem>>, %arg6: memref<32x4xf32, #tpu.memory_space<vmem>>, %arg7: memref<1x4xf32, #tpu.memory_space<vmem>>, %arg8: memref<2x4xf32, #tpu.memory_space<vmem>>) attributes {dimension_semantics = [#tpu.dimension_semantics<parallel>], iteration_bounds = array<i64: 1>, scalar_prefetch = 0 : i64, scratch_operands = 0 : i64, tpu.core_type = #tpu.core_type<tc>, window_params = [{transform_indices = @transform_0, window_bounds = array<i64: 2, 8>}, {pipeline_mode = #tpu.pipeline_mode<synchronous>, transform_indices = @transform_1, window_bounds = array<i64: 8, 32>}, {pipeline_mode = #tpu.pipeline_mode<synchronous>, transform_indices = @transform_2, window_bounds = array<i64: 1, 32>}, {pipeline_mode = #tpu.pipeline_mode<synchronous>, transform_indices = @transform_3, window_bounds = array<i64: 32, 32>}, {pipeline_mode = #tpu.pipeline_mode<synchronous>, transform_indices = @transform_4, window_bounds = array<i64: 1, 32>}, {pipeline_mode = #tpu.pipeline_mode<synchronous>, transform_indices = @transform_5, window_bounds = array<i64: 32, 4>}, {pipeline_mode = #tpu.pipeline_mode<synchronous>, transform_indices = @transform_6, window_bounds = array<i64: 1, 4>}, {transform_indices = @transform_7, window_bounds = array<i64: 2, 4>}]} {
    %c0 = arith.constant 0 : index
    %c0_0 = arith.constant 0 : index
    %0 = vector.load %arg1[%c0, %c0_0] : memref<2x8xf32, #tpu.memory_space<vmem>>, vector<2x8xf32>
    %c0_1 = arith.constant 0 : index
    %c0_2 = arith.constant 0 : index
    %1 = vector.load %arg2[%c0_1, %c0_2] : memref<8x32xf32, #tpu.memory_space<vmem>>, vector<8x32xf32>
    %cst = arith.constant dense<0.000000e+00> : vector<2x32xf32>
    %2 = tpu.matmul %0, %1, %cst {dimension_numbers = #tpu.dot_dimension_numbers<[1], [0], [0], [1], [0, 0, 1, 1], [], []>} : vector<2x8xf32>, vector<8x32xf32>, vector<2x32xf32> -> vector<2x32xf32>
    %c0_3 = arith.constant 0 : index
    %c0_4 = arith.constant 0 : index
    %3 = vector.load %arg3[%c0_3, %c0_4] : memref<1x32xf32, #tpu.memory_space<vmem>>, vector<1x32xf32>
    %4 = vector.broadcast %3 : vector<1x32xf32> to vector<2x32xf32>
    %5 = arith.addf %2, %4 : vector<2x32xf32>
    %cst_5 = arith.constant 0.000000e+00 : f32
    %6 = vector.broadcast %cst_5 : f32 to vector<2x32xf32>
    %7 = arith.maximumf %5, %6 : vector<2x32xf32>
    %c0_6 = arith.constant 0 : index
    %c0_7 = arith.constant 0 : index
    %8 = vector.load %arg4[%c0_6, %c0_7] : memref<32x32xf32, #tpu.memory_space<vmem>>, vector<32x32xf32>
    %cst_8 = arith.constant dense<0.000000e+00> : vector<2x32xf32>
    %9 = tpu.matmul %7, %8, %cst_8 {dimension_numbers = #tpu.dot_dimension_numbers<[1], [0], [0], [1], [0, 0, 1, 1], [], []>} : vector<2x32xf32>, vector<32x32xf32>, vector<2x32xf32> -> vector<2x32xf32>
    %c0_9 = arith.constant 0 : index
    %c0_10 = arith.constant 0 : index
    %10 = vector.load %arg5[%c0_9, %c0_10] : memref<1x32xf32, #tpu.memory_space<vmem>>, vector<1x32xf32>
    %11 = vector.broadcast %10 : vector<1x32xf32> to vector<2x32xf32>
    %12 = arith.addf %9, %11 : vector<2x32xf32>
    %cst_11 = arith.constant 0.000000e+00 : f32
    %13 = vector.broadcast %cst_11 : f32 to vector<2x32xf32>
    %14 = arith.maximumf %12, %13 : vector<2x32xf32>
    %c0_12 = arith.constant 0 : index
    %c0_13 = arith.constant 0 : index
    %15 = vector.load %arg6[%c0_12, %c0_13] : memref<32x4xf32, #tpu.memory_space<vmem>>, vector<32x4xf32>
    %cst_14 = arith.constant dense<0.000000e+00> : vector<2x4xf32>
    %16 = tpu.matmul %14, %15, %cst_14 {dimension_numbers = #tpu.dot_dimension_numbers<[1], [0], [0], [1], [0, 0, 1, 1], [], []>} : vector<2x32xf32>, vector<32x4xf32>, vector<2x4xf32> -> vector<2x4xf32>
    %c0_15 = arith.constant 0 : index
    %c0_16 = arith.constant 0 : index
    %17 = vector.load %arg7[%c0_15, %c0_16] : memref<1x4xf32, #tpu.memory_space<vmem>>, vector<1x4xf32>
    %18 = vector.broadcast %17 : vector<1x4xf32> to vector<2x4xf32>
    %19 = arith.addf %16, %18 : vector<2x4xf32>
    %c0_17 = arith.constant 0 : index
    %c0_18 = arith.constant 0 : index
    %20 = vector.load %arg8[%c0_17, %c0_18] : memref<2x4xf32, #tpu.memory_space<vmem>>, vector<2x4xf32>
    tpu.vector_store %arg8[%c0_17, %c0_18], %19 {strides = array<i32>} : memref<2x4xf32, #tpu.memory_space<vmem>>, vector<2x4xf32>,
    return
  }
  func.func @transform_0(%arg0: i32) -> (i32, i32) {
    %c0_i32 = arith.constant 0 : i32
    %c0_i32_0 = arith.constant 0 : i32
    return %arg0, %c0_i32 : i32, i32
  }
  func.func @transform_1(%arg0: i32) -> (i32, i32) {
    %c0_i32 = arith.constant 0 : i32
    %c0_i32_0 = arith.constant 0 : i32
    %c0_i32_1 = arith.constant 0 : i32
    return %c0_i32, %c0_i32_0 : i32, i32
  }
  func.func @transform_2(%arg0: i32) -> (i32, i32) {
    %c0_i32 = arith.constant 0 : i32
    %c0_i32_0 = arith.constant 0 : i32
    %c0_i32_1 = arith.constant 0 : i32
    return %c0_i32, %c0_i32_0 : i32, i32
  }
  func.func @transform_3(%arg0: i32) -> (i32, i32) {
    %c0_i32 = arith.constant 0 : i32
    %c0_i32_0 = arith.constant 0 : i32
    %c0_i32_1 = arith.constant 0 : i32
    return %c0_i32, %c0_i32_0 : i32, i32
  }
  func.func @transform_4(%arg0: i32) -> (i32, i32) {
    %c0_i32 = arith.constant 0 : i32
    %c0_i32_0 = arith.constant 0 : i32
    %c0_i32_1 = arith.constant 0 : i32
    return %c0_i32, %c0_i32_0 : i32, i32
  }
  func.func @transform_5(%arg0: i32) -> (i32, i32) {
    %c0_i32 = arith.constant 0 : i32
    %c0_i32_0 = arith.constant 0 : i32
    %c0_i32_1 = arith.constant 0 : i32
    return %c0_i32, %c0_i32_0 : i32, i32
  }
  func.func @transform_6(%arg0: i32) -> (i32, i32) {
    %c0_i32 = arith.constant 0 : i32
    %c0_i32_0 = arith.constant 0 : i32
    %c0_i32_1 = arith.constant 0 : i32
    return %c0_i32, %c0_i32_0 : i32, i32
  }
  func.func @transform_7(%arg0: i32) -> (i32, i32) {
    %c0_i32 = arith.constant 0 : i32
    %c0_i32_0 = arith.constant 0 : i32
    return %arg0, %c0_i32 : i32, i32
  }
}

</mosaic_0001>

<bundles_post_ra>
// kernel: tpu_custom_call.1
= control target key start
LH: loop header
LB: loop body
LE: loop exit
PB: predicated region body
PF: predicated region fallthrough
CT: control target
= control target key end

     0   :  { %12 = vsyncpa [#allocation3], 0  ;;  %s299_s0 = inlined_call_operand.vmem [shape: f32[2,8], index: 0, kind: input, shape index: {}]   ;;  %s300_s1 = inlined_call_operand.hbm [shape: f32[8,32], index: 1, kind: input, shape index: {}]   ;;  %s301_s2 = inlined_call_operand.vmem [shape: f32[1,32], index: 2, kind: input, shape index: {}]   ;;  %s302_s3 = inlined_call_operand.vmem [shape: f32[32,32], index: 3, kind: input, shape index: {}]   ;;  %s303_s4 = inlined_call_operand.vmem [shape: f32[1,32], index: 4, kind: input, shape index: {}]   ;;  %s304_s5 = inlined_call_operand.vmem [shape: f32[32,4], index: 5, kind: input, shape index: {}]   ;;  %s305_s6 = inlined_call_operand.vmem [shape: f32[1,4], index: 6, kind: input, shape index: {}]   ;;  %s306_s7 = inlined_call_operand.hbm [shape: f32[2,4], index: 7, kind: output, shape index: {}]  }
   0x1   :  { %13 = vsyncpa [#allocation4], 0  ;;  %s21_s26 = sshll.u32 %s300_s1, 4  ;;  %s215_s27 = smov [#allocation2]   ;;  %s22_s26 = int_to_ptr.hbm [resolvable:$true] %s21_s26 }
   0x2   :  { %s23_s28 = sshll.u32 %s215_s27, 4  ;;  %s24_s28 = int_to_ptr.vmem [resolvable:$true] %s23_s28 }
   0x3   :  { %26 = dma.hbm_to_vmem [thread:$0]  %s22_s26, 128, %s24_s28, [#allocation3]  }
   0x4   :  { %211 = dma.done.wait [#allocation3], 128  }
   0x5   :  { %212 = vsyncadd [#allocation3], 4294967168  ;;  %vm47_vm0 = vcmask 64512   ;;  %v42_v0 = vld [vmem:[#allocation2] sm:$0xff]  ;;  %v75_v2 = vld [vmem:[%s302_s3 + $0x18] sm:$0xff]  ;;  %vm80_vm1 = vcmask 261120  }
   0x6   :  { %v41_v1 = vld [vmem:[%s299_s0] sm:$0x3]  ;;  %66 = vmatpush.msra.mxu0 %v42_v0  ;;  %96 = vmatpush.msra.mxu1 %v75_v2  ;;  %v74_v3 = vld [vmem:[%s302_s3 + $0x10] sm:$0xff]  ;;  %v73_v4 = vld [vmem:[%s302_s3 + $0x8] sm:$0xff]  ;;  %s216_s26 = smov [#allocation5]   ;;  %s145_s30 = sshll.u32 %s306_s7, 4  ;;  %s146_s30 = int_to_ptr.hbm [resolvable:$true] %s145_s30 }
   0x7   :  { %155 = vmatmul.msk.f32.vlgmr.msra.gmra.mxu0 %vm47_vm0, %v41_v1  ;;  %v72_v5 = vld [vmem:[%s302_s3] sm:$0xff]  ;;  %v108_v6 = vld [vmem:[%s304_s5 + $0x18] sm:$0xff]  ;;  %v107_v11 = vld [vmem:[%s304_s5 + $0x10] sm:$0xff]  ;;  %s143_s27 = sshll.u32 %s216_s26, 4  ;;  %vm136_vm2 = vcmask 25600   ;;  %s144_s27 = int_to_ptr.vmem [resolvable:$true] %s143_s27 }
   0x8   :  { %97 = vmatpush.msra.mxu1 %v74_v3  ;;  %128 = vmatpush.msra.mxu2 %v108_v6  ;;  %v160_v7 = vld [vmem:[%s301_s2] ss:$0 sm:$0xff]  ;;  %v106_v12 = vld [vmem:[%s304_s5 + $0x8] sm:$0xff] }
   0x9   :  { %v105_v13 = vld [vmem:[%s304_s5] sm:$0xff] }
   0xa   :  { %98 = vmatpush.msra.mxu1 %v73_v4  ;;  %129 = vmatpush.msra.mxu2 %v107_v11  ;;  %v161_v14 = vld [vmem:[%s303_s4] ss:$0 sm:$0xff] }
   0xb   :  { %v162_v18 = vld [vmem:[%s305_s6] ss:$0 sm:$0xff] }
   0xc   :  { %99 = vmatpush.msra.mxu1 %v72_v5  ;;  %130 = vmatpush.msra.mxu2 %v106_v12 }
   0xe   :  { %131 = vmatpush.msra.mxu2 %v105_v13 }
  0x84   :  { %v68_v8 = vpop.f32.mrf.mxu0 }
  0x85   :  { %v69_v9 = vadd.f32 %v160_v7, %v68_v8 }
  0x87   :  { %v71_v10 = vmax.f32 %v69_v9, 0.0 }
  0x89   :  { %156 = vmatmul.msk.f32.vlgmr.msra.gmra.mxu1 %vm80_vm1, %v71_v10 }
 0x106   :  { %v101_v15 = vpop.f32.mrf.mxu1 }
 0x107   :  { %v102_v16 = vadd.f32 %v161_v14, %v101_v15 }
 0x109   :  { %v104_v17 = vmax.f32 %v102_v16, 0.0 }
 0x10b   :  { %157 = vmatmul.msk.f32.vlgmr.msra.gmra.mxu2 %vm80_vm1, %v104_v17 }
 0x18e   :  { %v133_v19 = vpop.f32.mrf.mxu2 }
 0x18f   :  { %v134_v20 = vadd.f32 %v162_v18, %v133_v19 }
 0x191   :  { %137 = vst.msk [vmem:[#allocation5] sm:$0x3] %vm136_vm2, %v134_v20 }
 0x192   :  { %148 = dma.vmem_to_hbm [thread:$0]  %s144_s27, 32, %s146_s30, [#allocation4]  }
 0x193   :  { %213 = dma.done.wait [#allocation4], 32  }
 0x194   :  { %214 = vsyncadd [#allocation4], 4294967264 }
 0x195   :  { %153 = vsyncpa [#allocation3], 1 }
 0x196   :  { %154 = vsyncpa [#allocation4], 1 }

</bundles_post_ra>
